<compile_context>
chip_gen: v5e
topology: v5e:2x2
jax: 0.10.0
libtpu: 0.0.40
codegen_flags: <defaults>
</compile_context>

<pallas_src>
import functools

import jax
import jax.numpy as jnp
from jax.experimental import pallas as pl
from jax.experimental.pallas import tpu as pltpu


def _banded_row_weights(w_oihw, width):
    """Fold the 3 kw taps (and horizontal zero padding) of a 3x3 conv into a
    block-banded per-row-tap weight.

    w_oihw: [Cout, Cin, 3, 3] (PyTorch OIHW) -> [3, width*Cin, width*Cout],
    band[kh, w_in*Cin + ci, w_out*Cout + co] = w[co, ci, kh, w_in - w_out + 1]
    (zero when |w_in - w_out| > 1, which also encodes padding=1 horizontally).
    """
    cout, cin = w_oihw.shape[0], w_oihw.shape[1]
    wt = jnp.transpose(w_oihw, (2, 3, 1, 0)).astype(jnp.float32)   # [3,3,cin,cout]
    band = jnp.zeros((3, width, cin, width, cout), jnp.float32)
    for kw in range(3):
        # indicator over (w_in, w_out): 1 iff w_in == w_out + (kw - 1)
        diag = jnp.eye(width, width, k=1 - kw, dtype=jnp.float32)
        band = band + diag[None, :, None, :, None] * wt[:, kw][:, None, :, None, :]
    return band.reshape(3, width * cin, width * cout)


def _fused_kernel(x_ref, w1_ref, b1_ref, w2_ref, b2_ref, pre1_ref, out_ref, *, H):
    """conv1(3x3,pad1)+bias -> pre1 (hooked), relu, conv2(3x3,pad1)+bias, relu.

    x_ref:    [B, H, W*CIN]   row-packed input tile (lane = w*CIN + ci)
    w1_ref:   [3, W*CIN, W*C1] banded per-row-tap conv1 weights
    b1_ref:   [1, W*C1]
    w2_ref:   [3, W*C1, W*C2] banded per-row-tap conv2 weights
    b2_ref:   [1, W*C2]
    pre1_ref: [B, H, W*C1]    hooked conv1 output (bias added, pre-ReLU)
    out_ref:  [B, H, W*C2]    model output (post conv2 + ReLU)
    """
    B = x_ref.shape[0]

    def conv3x3_rows(inp, w_ref, b_ref):
        # inp: [B, H, K] row-packed; w_ref: [3, K, N] banded row-tap weights.
        K = inp.shape[-1]
        N = w_ref.shape[-1]
        lhs = inp.reshape(B * H, K)
        y0 = jnp.dot(lhs, w_ref[0],
                     preferred_element_type=jnp.float32).reshape(B, H, N)
        y1 = (jnp.dot(lhs, w_ref[1], preferred_element_type=jnp.float32)
              + b_ref[...]).reshape(B, H, N)
        y2 = jnp.dot(lhs, w_ref[2],
                     preferred_element_type=jnp.float32).reshape(B, H, N)
        # Vertical padding=1: row h collects y0[h-1] + y1[h] + y2[h+1], with
        # out-of-range rows contributing zero (shift via concat with a 0-row).
        zrow = jnp.zeros((B, 1, N), jnp.float32)
        from_above = jnp.concatenate([zrow, y0[:, :H - 1, :]], axis=1)  # kh=0
        from_below = jnp.concatenate([y2[:, 1:, :], zrow], axis=1)      # kh=2
        return from_above + y1 + from_below

    x = x_ref[...]
    pre1 = conv3x3_rows(x, w1_ref, b1_ref)      # [B, H, W*C1]
    pre1_ref[...] = pre1                        # hook capture (pre-ReLU)
    act = jnp.maximum(pre1, 0.0)                # stays in vregs/VMEM only
    out = conv3x3_rows(act, w2_ref, b2_ref)     # [B, H, W*C2]
    out_ref[...] = jnp.maximum(out, 0.0)


def fused_conv_relu_conv_relu(x_nchw, params, b_tile=8):
    """Fused conv1+relu+conv2+relu.  Returns (out_nchw, pre1_nchw)."""
    n, cin, h, w = x_nchw.shape
    c1 = params["w1"].shape[0]
    c2 = params["w2"].shape[0]

    bt = min(b_tile, n)
    n_blocks = pl.cdiv(n, bt)
    n_pad = n_blocks * bt

    # One NCHW -> row-packed [N, H, W*Cin] conversion (tiny tensors).
    xp = jnp.transpose(x_nchw, (0, 2, 3, 1)).astype(jnp.float32)
    xp = xp.reshape(n, h, w * cin)
    if n_pad != n:
        xp = jnp.pad(xp, ((0, n_pad - n), (0, 0), (0, 0)))

    w1b = _banded_row_weights(params["w1"], w)                    # [3, w*cin, w*c1]
    w2b = _banded_row_weights(params["w2"], w)                    # [3, w*c1, w*c2]
    b1r = jnp.tile(params["b1"].astype(jnp.float32), w)[None, :]  # [1, w*c1]
    b2r = jnp.tile(params["b2"].astype(jnp.float32), w)[None, :]  # [1, w*c2]

    kern = functools.partial(_fused_kernel, H=h)

    pre1_p, out_p = pl.pallas_call(
        kern,
        out_shape=(
            jax.ShapeDtypeStruct((n_pad, h, w * c1), jnp.float32),
            jax.ShapeDtypeStruct((n_pad, h, w * c2), jnp.float32),
        ),
        grid=(n_blocks,),
        in_specs=[
            pl.BlockSpec((bt, h, w * cin), lambda i: (i, 0, 0)),
            # Grid-invariant weights/biases (constant index_map -> no re-DMA).
            pl.BlockSpec((3, w * cin, w * c1), lambda i: (0, 0, 0)),
            pl.BlockSpec((1, w * c1), lambda i: (0, 0)),
            pl.BlockSpec((3, w * c1, w * c2), lambda i: (0, 0, 0)),
            pl.BlockSpec((1, w * c2), lambda i: (0, 0)),
        ],
        out_specs=(
            pl.BlockSpec((bt, h, w * c1), lambda i: (i, 0, 0)),
            pl.BlockSpec((bt, h, w * c2), lambda i: (i, 0, 0)),
        ),
        compiler_params=pltpu.CompilerParams(
            dimension_semantics=("parallel",)),
    )(xp, w1b, b1r, w2b, b2r)

    to_nchw = lambda t, c: jnp.transpose(t[:n].reshape(n, h, w, c), (0, 3, 1, 2))
    return to_nchw(out_p, c2), to_nchw(pre1_p, c1)


# ----------------------------------------------------------------------------
# Synthetic "model" parameters + FeatureExtractor semantics.
# ----------------------------------------------------------------------------
def init_params(key):
    """Deterministic init (shapes per Conv2d(cin, cout, 3, padding=1))."""
    k1, k2, k3, k4 = jax.random.split(key, 4)
    w1 = 0.1 * jax.random.normal(k1, (8, 4, 3, 3), dtype=jnp.float32)
    b1 = 0.1 * jax.random.normal(k2, (8,), dtype=jnp.float32)
    w2 = 0.1 * jax.random.normal(k3, (8, 8, 3, 3), dtype=jnp.float32)
    b2 = 0.1 * jax.random.normal(k4, (8,), dtype=jnp.float32)
    return dict(w1=w1, b1=b1, w2=w2, b2=b2)


@jax.jit
def feature_extractor_forward(x, params):
    """Equivalent of FeatureExtractor(model, 'conv1')(x).

    Returns (model_output, hooked_features); hooked_features is the raw conv1
    module output (bias added, pre-ReLU), exactly what the forward hook sees.
    """
    # TODO(synk): dynamic named_modules() lookup / hook registration is Python
    # object plumbing with no kernel equivalent; the hook target is fixed here.
    out, pre1 = fused_conv_relu_conv_relu(x, params)
    return out, pre1


# ----------------------------------------------------------------------------
# Pure-JAX reference for a numerical sanity check.
# ----------------------------------------------------------------------------
def _ref_conv(x, w, b):
    y = jax.lax.conv_general_dilated(
        x, w, window_strides=(1, 1), padding=((1, 1), (1, 1)),
        dimension_numbers=("NCHW", "OIHW", "NCHW"))
    return y + b.reshape(1, -1, 1, 1)


def _ref_forward(x, p):
    pre1 = _ref_conv(x, p["w1"], p["b1"])
    act1 = jnp.maximum(pre1, 0.0)
    pre2 = _ref_conv(act1, p["w2"], p["b2"])
    return jnp.maximum(pre2, 0.0), pre1


if __name__ == "__main__":
    key = jax.random.PRNGKey(0)
    kx, kp = jax.random.split(key)
    x = jax.random.normal(kx, (2, 4, 16, 16), dtype=jnp.float32)   # NCHW
    params = init_params(kp)

    out, feats = feature_extractor_forward(x, params)
    out = jax.block_until_ready(out)
    feats = jax.block_until_ready(feats)

    assert out.shape == (2, 8, 16, 16), out.shape
    assert feats.shape == (2, 8, 16, 16), feats.shape

    ref_out, ref_feats = _ref_forward(x, params)
    assert jnp.allclose(out, ref_out, atol=1e-4, rtol=1e-4)
    assert jnp.allclose(feats, ref_feats, atol=1e-4, rtol=1e-4)

    print("KERNEL_OK")
</pallas_src>

<mosaic_0001>
module attributes {stable_mosaic.version = 11 : i64} {
  func.func @_fused_kernel(%arg0: i32, %arg1: memref<2x16x64xf32, #tpu.memory_space<vmem>>, %arg2: memref<3x64x128xf32, #tpu.memory_space<vmem>>, %arg3: memref<1x128xf32, #tpu.memory_space<vmem>>, %arg4: memref<3x128x128xf32, #tpu.memory_space<vmem>>, %arg5: memref<1x128xf32, #tpu.memory_space<vmem>>, %arg6: memref<2x16x128xf32, #tpu.memory_space<vmem>>, %arg7: memref<2x16x128xf32, #tpu.memory_space<vmem>>) attributes {dimension_semantics = [#tpu.dimension_semantics<parallel>], iteration_bounds = array<i64: 1>, scalar_prefetch = 0 : i64, scratch_operands = 0 : i64, tpu.core_type = #tpu.core_type<tc>, window_params = [{transform_indices = @transform_0, window_bounds = array<i64: 2, 16, 64>}, {pipeline_mode = #tpu.pipeline_mode<synchronous>, transform_indices = @transform_1, window_bounds = array<i64: 3, 64, 128>}, {pipeline_mode = #tpu.pipeline_mode<synchronous>, transform_indices = @transform_2, window_bounds = array<i64: 1, 128>}, {pipeline_mode = #tpu.pipeline_mode<synchronous>, transform_indices = @transform_3, window_bounds = array<i64: 3, 128, 128>}, {pipeline_mode = #tpu.pipeline_mode<synchronous>, transform_indices = @transform_4, window_bounds = array<i64: 1, 128>}, {transform_indices = @transform_5, window_bounds = array<i64: 2, 16, 128>}, {transform_indices = @transform_6, window_bounds = array<i64: 2, 16, 128>}]} {
    %c0 = arith.constant 0 : index
    %c0_0 = arith.constant 0 : index
    %c0_1 = arith.constant 0 : index
    %0 = vector.load %arg1[%c0, %c0_0, %c0_1] : memref<2x16x64xf32, #tpu.memory_space<vmem>>, vector<2x16x64xf32>
    %1 = vector.shape_cast %0 : vector<2x16x64xf32> to vector<32x64xf32>
    %c0_2 = arith.constant 0 : index
    %c0_3 = arith.constant 0 : index
    %c0_4 = arith.constant 0 : index
    %2 = vector.load %arg2[%c0_2, %c0_3, %c0_4] : memref<3x64x128xf32, #tpu.memory_space<vmem>>, vector<1x64x128xf32>
    %3 = vector.shape_cast %2 : vector<1x64x128xf32> to vector<64x128xf32>
    %cst = arith.constant dense<0.000000e+00> : vector<32x128xf32>
    %4 = tpu.matmul %1, %3, %cst {dimension_numbers = #tpu.dot_dimension_numbers<[1], [0], [0], [1], [0, 0, 1, 1], [], []>} : vector<32x64xf32>, vector<64x128xf32>, vector<32x128xf32> -> vector<32x128xf32>
    %5 = vector.shape_cast %4 : vector<32x128xf32> to vector<2x16x128xf32>
    %c1 = arith.constant 1 : index
    %c0_5 = arith.constant 0 : index
    %c0_6 = arith.constant 0 : index
    %6 = vector.load %arg2[%c1, %c0_5, %c0_6] : memref<3x64x128xf32, #tpu.memory_space<vmem>>, vector<1x64x128xf32>
    %7 = vector.shape_cast %6 : vector<1x64x128xf32> to vector<64x128xf32>
    %cst_7 = arith.constant dense<0.000000e+00> : vector<32x128xf32>
    %8 = tpu.matmul %1, %7, %cst_7 {dimension_numbers = #tpu.dot_dimension_numbers<[1], [0], [0], [1], [0, 0, 1, 1], [], []>} : vector<32x64xf32>, vector<64x128xf32>, vector<32x128xf32> -> vector<32x128xf32>
    %c0_8 = arith.constant 0 : index
    %c0_9 = arith.constant 0 : index
    %9 = vector.load %arg3[%c0_8, %c0_9] : memref<1x128xf32, #tpu.memory_space<vmem>>, vector<1x128xf32>
    %10 = vector.broadcast %9 : vector<1x128xf32> to vector<32x128xf32>
    %11 = arith.addf %8, %10 : vector<32x128xf32>
    %12 = vector.shape_cast %11 : vector<32x128xf32> to vector<2x16x128xf32>
    %c2 = arith.constant 2 : index
    %c0_10 = arith.constant 0 : index
    %c0_11 = arith.constant 0 : index
    %13 = vector.load %arg2[%c2, %c0_10, %c0_11] : memref<3x64x128xf32, #tpu.memory_space<vmem>>, vector<1x64x128xf32>
    %14 = vector.shape_cast %13 : vector<1x64x128xf32> to vector<64x128xf32>
    %cst_12 = arith.constant dense<0.000000e+00> : vector<32x128xf32>
    %15 = tpu.matmul %1, %14, %cst_12 {dimension_numbers = #tpu.dot_dimension_numbers<[1], [0], [0], [1], [0, 0, 1, 1], [], []>} : vector<32x64xf32>, vector<64x128xf32>, vector<32x128xf32> -> vector<32x128xf32>
    %16 = vector.shape_cast %15 : vector<32x128xf32> to vector<2x16x128xf32>
    %cst_13 = arith.constant 0.000000e+00 : f32
    %17 = vector.broadcast %cst_13 : f32 to vector<2x1x128xf32>
    %18 = vector.extract_strided_slice %5 {offsets = [0, 0, 0], sizes = [2, 15, 128], strides = [1, 1, 1]} : vector<2x16x128xf32> to vector<2x15x128xf32>
    %19 = tpu.concatenate %17, %18 in 1 : vector<2x1x128xf32>, vector<2x15x128xf32> -> vector<2x16x128xf32>
    %20 = vector.extract_strided_slice %16 {offsets = [0, 1, 0], sizes = [2, 15, 128], strides = [1, 1, 1]} : vector<2x16x128xf32> to vector<2x15x128xf32>
    %21 = tpu.concatenate %20, %17 in 1 : vector<2x15x128xf32>, vector<2x1x128xf32> -> vector<2x16x128xf32>
    %22 = arith.addf %19, %12 : vector<2x16x128xf32>
    %23 = arith.addf %22, %21 : vector<2x16x128xf32>
    %c0_14 = arith.constant 0 : index
    %c0_15 = arith.constant 0 : index
    %c0_16 = arith.constant 0 : index
    %24 = vector.load %arg6[%c0_14, %c0_15, %c0_16] : memref<2x16x128xf32, #tpu.memory_space<vmem>>, vector<2x16x128xf32>
    tpu.vector_store %arg6[%c0_14, %c0_15, %c0_16], %23 {strides = array<i32>} : memref<2x16x128xf32, #tpu.memory_space<vmem>>, vector<2x16x128xf32>,
    %cst_17 = arith.constant 0.000000e+00 : f32
    %25 = vector.broadcast %cst_17 : f32 to vector<2x16x128xf32>
    %26 = arith.maximumf %23, %25 : vector<2x16x128xf32>
    %27 = vector.shape_cast %26 : vector<2x16x128xf32> to vector<32x128xf32>
    %c0_18 = arith.constant 0 : index
    %c0_19 = arith.constant 0 : index
    %c0_20 = arith.constant 0 : index
    %28 = vector.load %arg4[%c0_18, %c0_19, %c0_20] : memref<3x128x128xf32, #tpu.memory_space<vmem>>, vector<1x128x128xf32>
    %29 = vector.shape_cast %28 : vector<1x128x128xf32> to vector<128x128xf32>
    %cst_21 = arith.constant dense<0.000000e+00> : vector<32x128xf32>
    %30 = tpu.matmul %27, %29, %cst_21 {dimension_numbers = #tpu.dot_dimension_numbers<[1], [0], [0], [1], [0, 0, 1, 1], [], []>} : vector<32x128xf32>, vector<128x128xf32>, vector<32x128xf32> -> vector<32x128xf32>
    %31 = vector.shape_cast %30 : vector<32x128xf32> to vector<2x16x128xf32>
    %c1_22 = arith.constant 1 : index
    %c0_23 = arith.constant 0 : index
    %c0_24 = arith.constant 0 : index
    %32 = vector.load %arg4[%c1_22, %c0_23, %c0_24] : memref<3x128x128xf32, #tpu.memory_space<vmem>>, vector<1x128x128xf32>
    %33 = vector.shape_cast %32 : vector<1x128x128xf32> to vector<128x128xf32>
    %cst_25 = arith.constant dense<0.000000e+00> : vector<32x128xf32>
    %34 = tpu.matmul %27, %33, %cst_25 {dimension_numbers = #tpu.dot_dimension_numbers<[1], [0], [0], [1], [0, 0, 1, 1], [], []>} : vector<32x128xf32>, vector<128x128xf32>, vector<32x128xf32> -> vector<32x128xf32>
    %c0_26 = arith.constant 0 : index
    %c0_27 = arith.constant 0 : index
    %35 = vector.load %arg5[%c0_26, %c0_27] : memref<1x128xf32, #tpu.memory_space<vmem>>, vector<1x128xf32>
    %36 = vector.broadcast %35 : vector<1x128xf32> to vector<32x128xf32>
    %37 = arith.addf %34, %36 : vector<32x128xf32>
    %38 = vector.shape_cast %37 : vector<32x128xf32> to vector<2x16x128xf32>
    %c2_28 = arith.constant 2 : index
    %c0_29 = arith.constant 0 : index
    %c0_30 = arith.constant 0 : index
    %39 = vector.load %arg4[%c2_28, %c0_29, %c0_30] : memref<3x128x128xf32, #tpu.memory_space<vmem>>, vector<1x128x128xf32>
    %40 = vector.shape_cast %39 : vector<1x128x128xf32> to vector<128x128xf32>
    %cst_31 = arith.constant dense<0.000000e+00> : vector<32x128xf32>
    %41 = tpu.matmul %27, %40, %cst_31 {dimension_numbers = #tpu.dot_dimension_numbers<[1], [0], [0], [1], [0, 0, 1, 1], [], []>} : vector<32x128xf32>, vector<128x128xf32>, vector<32x128xf32> -> vector<32x128xf32>
    %42 = vector.shape_cast %41 : vector<32x128xf32> to vector<2x16x128xf32>
    %cst_32 = arith.constant 0.000000e+00 : f32
    %43 = vector.broadcast %cst_32 : f32 to vector<2x1x128xf32>
    %44 = vector.extract_strided_slice %31 {offsets = [0, 0, 0], sizes = [2, 15, 128], strides = [1, 1, 1]} : vector<2x16x128xf32> to vector<2x15x128xf32>
    %45 = tpu.concatenate %43, %44 in 1 : vector<2x1x128xf32>, vector<2x15x128xf32> -> vector<2x16x128xf32>
    %46 = vector.extract_strided_slice %42 {offsets = [0, 1, 0], sizes = [2, 15, 128], strides = [1, 1, 1]} : vector<2x16x128xf32> to vector<2x15x128xf32>
    %47 = tpu.concatenate %46, %43 in 1 : vector<2x15x128xf32>, vector<2x1x128xf32> -> vector<2x16x128xf32>
    %48 = arith.addf %45, %38 : vector<2x16x128xf32>
    %49 = arith.addf %48, %47 : vector<2x16x128xf32>
    %cst_33 = arith.constant 0.000000e+00 : f32
    %50 = vector.broadcast %cst_33 : f32 to vector<2x16x128xf32>
    %51 = arith.maximumf %49, %50 : vector<2x16x128xf32>
    %c0_34 = arith.constant 0 : index
    %c0_35 = arith.constant 0 : index
    %c0_36 = arith.constant 0 : index
    %52 = vector.load %arg7[%c0_34, %c0_35, %c0_36] : memref<2x16x128xf32, #tpu.memory_space<vmem>>, vector<2x16x128xf32>
    tpu.vector_store %arg7[%c0_34, %c0_35, %c0_36], %51 {strides = array<i32>} : memref<2x16x128xf32, #tpu.memory_space<vmem>>, vector<2x16x128xf32>,
    return
  }
  func.func @transform_0(%arg0: i32) -> (i32, i32, i32) {
    %c0_i32 = arith.constant 0 : i32
    %c0_i32_0 = arith.constant 0 : i32
    %c0_i32_1 = arith.constant 0 : i32
    return %arg0, %c0_i32, %c0_i32_0 : i32, i32, i32
  }
  func.func @transform_1(%arg0: i32) -> (i32, i32, i32) {
    %c0_i32 = arith.constant 0 : i32
    %c0_i32_0 = arith.constant 0 : i32
    %c0_i32_1 = arith.constant 0 : i32
    %c0_i32_2 = arith.constant 0 : i32
    return %c0_i32, %c0_i32_0, %c0_i32_1 : i32, i32, i32
  }
  func.func @transform_2(%arg0: i32) -> (i32, i32) {
    %c0_i32 = arith.constant 0 : i32
    %c0_i32_0 = arith.constant 0 : i32
    %c0_i32_1 = arith.constant 0 : i32
    return %c0_i32, %c0_i32_0 : i32, i32
  }
  func.func @transform_3(%arg0: i32) -> (i32, i32, i32) {
    %c0_i32 = arith.constant 0 : i32
    %c0_i32_0 = arith.constant 0 : i32
    %c0_i32_1 = arith.constant 0 : i32
    %c0_i32_2 = arith.constant 0 : i32
    return %c0_i32, %c0_i32_0, %c0_i32_1 : i32, i32, i32
  }
  func.func @transform_4(%arg0: i32) -> (i32, i32) {
    %c0_i32 = arith.constant 0 : i32
    %c0_i32_0 = arith.constant 0 : i32
    %c0_i32_1 = arith.constant 0 : i32
    return %c0_i32, %c0_i32_0 : i32, i32
  }
  func.func @transform_5(%arg0: i32) -> (i32, i32, i32) {
    %c0_i32 = arith.constant 0 : i32
    %c0_i32_0 = arith.constant 0 : i32
    %c0_i32_1 = arith.constant 0 : i32
    return %arg0, %c0_i32, %c0_i32_0 : i32, i32, i32
  }
  func.func @transform_6(%arg0: i32) -> (i32, i32, i32) {
    %c0_i32 = arith.constant 0 : i32
    %c0_i32_0 = arith.constant 0 : i32
    %c0_i32_1 = arith.constant 0 : i32
    return %arg0, %c0_i32, %c0_i32_0 : i32, i32, i32
  }
}

</mosaic_0001>

<bundles_post_ra>
// kernel: tile.13
= control target key start
LH: loop header
LB: loop body
LE: loop exit
PB: predicated region body
PF: predicated region fallthrough
CT: control target
= control target key end

     0   :  { %s28_s0 = inlined_call_operand.vmem [shape: f32[8], index: 0, kind: input, shape index: {}]   ;;  %s29_s1 = inlined_call_operand.vmem [shape: f32[16,8], index: 1, kind: output, shape index: {}]  }
   0x1   :  { %v4_v0 = vld [vmem:[%s28_s0] ss:$0 sm:$0xff] }
   0x2   :  { %5 = vst [vmem:[%s29_s1] sm:$0xff] %v4_v0 }
   0x3   :  { %8 = vst [vmem:[%s29_s1 + $0x8] sm:$0xff] %v4_v0 }

// kernel: tile.14
= control target key start
LH: loop header
LB: loop body
LE: loop exit
PB: predicated region body
PF: predicated region fallthrough
CT: control target
= control target key end

     0   :  { %s131_s10 = smov 120   ;;  %s132_s11 = smov 104   ;;  %vm3_vm0 = vcmask 64512   ;;  %vm9_vm1 = vcmask 1048512   ;;  %vm15_vm2 = vcmask 982912   ;;  %vm21_vm3 = vcmask 917312   ;;  %s207_s0 = inlined_call_operand.vmem [shape: f32[16,8], index: 0, kind: input, shape index: {}]   ;;  %s208_s1 = inlined_call_operand.vmem [shape: f32[1,128], index: 1, kind: output, shape index: {}]  }
   0x1   :  { %v101_v0 = vld [vmem:[%s207_s0 + $0xf] sm:$0x1]   ;;  %v103_v1 = vld [vmem:[%s207_s0 + $0xd] sm:$0x1]   ;;  %v105_v2 = vld [vmem:[%s207_s0 + $0xb] sm:$0x1]  }
   0x2   :  { %7 = vrot.lane.b32.xlu0 %v101_v0, %s131_s10  ;;  %19 = vrot.lane.b32.xlu1 %v103_v1, %s132_s11  ;;  %s133_s14 = smov 88   ;;  %v102_v3 = vld [vmem:[%s207_s0 + $0xe] sm:$0x1]   ;;  %v104_v4 = vld [vmem:[%s207_s0 + $0xc] sm:$0x1]   ;;  %s134_s19 = smov 112  }
   0x3   :  { %31 = vrot.lane.b32.xlu2 %v105_v2, %s133_s14  ;;  %s135_s20 = smov 96   ;;  %v106_v5 = vld [vmem:[%s207_s0 + $0xa] sm:$0x1]   ;;  %s136_s23 = smov 80   ;;  %v107_v6 = vld [vmem:[%s207_s0 + $0x9] sm:$0x1]  }
   0x4   :  { %v108_v7 = vld [vmem:[%s207_s0 + $0x8] sm:$0x1]   ;;  %s137_s28 = smov 72   ;;  %s138_s29 = smov 64   ;;  %v109_v8 = vld [vmem:[%s207_s0 + $0x7] sm:$0x1]  }
   0x5   :  { %s139_s3 = smov 56   ;;  %v110_v9 = vld [vmem:[%s207_s0 + $0x6] sm:$0x1]   ;;  %v111_v10 = vld [vmem:[%s207_s0 + $0x5] sm:$0x1]   ;;  %s140_s8 = smov 48  }
   0x6   :  { %s141_s9 = smov 40   ;;  %v112_v11 = vld [vmem:[%s207_s0 + $0x4] sm:$0x1]   ;;  %s142_s12 = smov 32   ;;  %v113_v12 = vld [vmem:[%s207_s0 + $0x3] sm:$0x1]  }
   0x7   :  { %v114_v13 = vld [vmem:[%s207_s0 + $0x2] sm:$0x1]   ;;  %s143_s17 = smov 24   ;;  %s144_s18 = smov 16   ;;  %v115_v14 = vld [vmem:[%s207_s0 + $0x1] sm:$0x1]  }
   0x8   :  { %s145_s21 = smov 8   ;;  %v2_v15 = vld [vmem:[%s207_s0] sm:$0x1]   ;;  %vm27_vm4 = vcmask 851712   ;;  %vm33_vm5 = vcmask 786112   ;;  %vm39_vm6 = vcmask 720512  }
   0x9   :  { %4 = vst.msk [vmem:[#allocation0] sm:$0x1] %vm3_vm0, %v2_v15   ;;  %vm45_vm7 = vcmask 654912   ;;  %vm51_vm8 = vcmask 589312   ;;  %vm57_vm9 = vcmask 523712   ;;  %vm63_vm10 = vcmask 458112  }
   0xa   :  { %13 = vrot.lane.b32.xlu0 %v102_v3, %s134_s19  ;;  %25 = vrot.lane.b32.xlu1 %v104_v4, %s135_s20  ;;  %vm69_vm11 = vcmask 392512   ;;  %vm75_vm12 = vcmask 326912   ;;  %vm81_vm13 = vcmask 261312   ;;  %vm87_vm14 = vcmask 195712  }
   0xb   :  { %37 = vrot.lane.b32.xlu2 %v106_v5, %s136_s23  ;;  %vm93_vm15 = vcmask 130112  }
  0x12   :  { %43 = vrot.lane.b32.xlu0 %v107_v6, %s137_s28  ;;  %49 = vrot.lane.b32.xlu1 %v108_v7, %s138_s29 }
  0x13   :  { %55 = vrot.lane.b32.xlu2 %v109_v8, %s139_s3 }
  0x1a   :  { %61 = vrot.lane.b32.xlu0 %v110_v9, %s140_s8  ;;  %67 = vrot.lane.b32.xlu1 %v111_v10, %s141_s9 }
  0x1b   :  { %73 = vrot.lane.b32.xlu2 %v112_v11, %s142_s12 }
  0x22   :  { %79 = vrot.lane.b32.xlu0 %v113_v12, %s143_s17  ;;  %85 = vrot.lane.b32.xlu1 %v114_v13, %s144_s18 }
  0x23   :  { %91 = vrot.lane.b32.xlu2 %v115_v14, %s145_s21 }
  0x5d   :  { %v32_v16 = vpop.permute.xlu2 %31  }
  0x65   :  { %v38_v17 = vpop.permute.xlu2 %37  }
  0x6d   :  { %v56_v18 = vpop.permute.xlu2 %55  }
  0x74   :  { %v8_v19 = vpop.permute.xlu0 %7   ;;  %v20_v20 = vpop.permute.xlu1 %19  }
  0x75   :  { %10 = vst.msk [vmem:[#allocation0] sm:$0x1] %vm9_vm1, %v8_v19   ;;  %v74_v21 = vpop.permute.xlu2 %73  }
  0x7c   :  { %v14_v22 = vpop.permute.xlu0 %13   ;;  %v26_v23 = vpop.permute.xlu1 %25  }
  0x7d   :  { %16 = vst.msk [vmem:[#allocation0] sm:$0x1] %vm15_vm2, %v14_v22   ;;  %v92_v24 = vpop.permute.xlu2 %91  }
  0x7e   :  { %22 = vst.msk [vmem:[#allocation0] sm:$0x1] %vm21_vm3, %v20_v20  }
  0x7f   :  { %28 = vst.msk [vmem:[#allocation0] sm:$0x1] %vm27_vm4, %v26_v23  }
  0x80   :  { %34 = vst.msk [vmem:[#allocation0] sm:$0x1] %vm33_vm5, %v32_v16  }
  0x81   :  { %40 = vst.msk [vmem:[#allocation0] sm:$0x1] %vm39_vm6, %v38_v17  }
  0x84   :  { %v44_v25 = vpop.permute.xlu0 %43   ;;  %v50_v26 = vpop.permute.xlu1 %49  }
  0x85   :  { %46 = vst.msk [vmem:[#allocation0] sm:$0x1] %vm45_vm7, %v44_v25  }
  0x86   :  { %52 = vst.msk [vmem:[#allocation0] sm:$0x1] %vm51_vm8, %v50_v26  }
  0x87   :  { %58 = vst.msk [vmem:[#allocation0] sm:$0x1] %vm57_vm9, %v56_v18  }
  0x8c   :  { %v62_v27 = vpop.permute.xlu0 %61   ;;  %v68_v28 = vpop.permute.xlu1 %67  }
  0x8d   :  { %64 = vst.msk [vmem:[#allocation0] sm:$0x1] %vm63_vm10, %v62_v27  }
  0x8e   :  { %70 = vst.msk [vmem:[#allocation0] sm:$0x1] %vm69_vm11, %v68_v28  }
  0x8f   :  { %76 = vst.msk [vmem:[#allocation0] sm:$0x1] %vm75_vm12, %v74_v21  }
  0x94   :  { %v80_v29 = vpop.permute.xlu0 %79   ;;  %v86_v30 = vpop.permute.xlu1 %85  }
  0x95   :  { %82 = vst.msk [vmem:[#allocation0] sm:$0x1] %vm81_vm13, %v80_v29  }
  0x96   :  { %88 = vst.msk [vmem:[#allocation0] sm:$0x1] %vm87_vm14, %v86_v30  }
  0x97   :  { %94 = vst.msk [vmem:[#allocation0] sm:$0x1] %vm93_vm15, %v92_v24  }
  0x9e   :  { %v97_v31 = vld [vmem:[#allocation0] sm:$0x1] }
  0x9f   :  { %100 = vst [vmem:[%s208_s1] sm:$0x1] %v97_v31 }

// kernel: feature_extractor_forward.1
= control target key start
LH: loop header
LB: loop body
LE: loop exit
PB: predicated region body
PF: predicated region fallthrough
CT: control target
= control target key end

     0   :  { %vm34_vm0 = vcmask 523264   ;;  %vm160_vm1 = vcmask 1040384   ;;  %vm177_vm2 = vcmask 1046528   ;;  %s802_s1 = inlined_call_operand.vmem [shape: f32[3,64,128], index: 1, kind: input, shape index: {}]   ;;  %s803_s3 = inlined_call_operand.vmem [shape: f32[3,128,128], index: 3, kind: input, shape index: {}]   ;;  %s804_s0 = inlined_call_operand.vmem [shape: f32[2,16,64], index: 0, kind: input, shape index: {}]   ;;  %s805_s2 = inlined_call_operand.vmem [shape: f32[1,128], index: 2, kind: input, shape index: {}]   ;;  %s806_s4 = inlined_call_operand.vmem [shape: f32[1,128], index: 4, kind: input, shape index: {}]   ;;  %s807_s5 = inlined_call_operand.vmem [shape: f32[2,16,128], index: 5, kind: output, shape index: {0}]   ;;  %s808_s6 = inlined_call_operand.vmem [shape: f32[2,16,128], index: 6, kind: output, shape index: {1}]  }
   0x1   :  { %v426_v0 = vld [vmem:[%s802_s1 + $0xb8] sm:$0xff]  ;;  %v425_v1 = vld [vmem:[%s802_s1 + $0xb0] sm:$0xff]  ;;  %v424_v5 = vld [vmem:[%s802_s1 + $0xa8] sm:$0xff] }
   0x2   :  { %v33_v2 = vld [vmem:[%s802_s1 + $0x38] sm:$0xff]  ;;  %135 = vmatpush.msra.mxu2 %v426_v0  ;;  %v32_v4 = vld [vmem:[%s802_s1 + $0x30] sm:$0xff]  ;;  %v31_v7 = vld [vmem:[%s802_s1 + $0x28] sm:$0xff] }
   0x3   :  { %55 = vmatpush.msra.mxu0 %v33_v2  ;;  %v414_v3 = vld [vmem:[%s802_s1 + $0x78] sm:$0xff]  ;;  %v413_v6 = vld [vmem:[%s802_s1 + $0x70] sm:$0xff]  ;;  %v412_v8 = vld [vmem:[%s802_s1 + $0x68] sm:$0xff] }
   0x4   :  { %97 = vmatpush.msra.mxu1 %v414_v3  ;;  %136 = vmatpush.msra.mxu2 %v425_v1  ;;  %v423_v9 = vld [vmem:[%s802_s1 + $0xa0] sm:$0xff]  ;;  %v422_v12 = vld [vmem:[%s802_s1 + $0x98] sm:$0xff]  ;;  %v421_v15 = vld [vmem:[%s802_s1 + $0x90] sm:$0xff] }
   0x5   :  { %56 = vmatpush.msra.mxu0 %v32_v4  ;;  %v30_v10 = vld [vmem:[%s802_s1 + $0x20] sm:$0xff]  ;;  %v29_v13 = vld [vmem:[%s802_s1 + $0x18] sm:$0xff]  ;;  %v28_v16 = vld [vmem:[%s802_s1 + $0x10] sm:$0xff] }
   0x6   :  { %98 = vmatpush.msra.mxu1 %v413_v6  ;;  %137 = vmatpush.msra.mxu2 %v424_v5  ;;  %v411_v11 = vld [vmem:[%s802_s1 + $0x60] sm:$0xff]  ;;  %v410_v14 = vld [vmem:[%s802_s1 + $0x58] sm:$0xff]  ;;  %v409_v17 = vld [vmem:[%s802_s1 + $0x50] sm:$0xff] }
   0x7   :  { %57 = vmatpush.msra.mxu0 %v31_v7  ;;  %v420_v18 = vld [vmem:[%s802_s1 + $0x88] sm:$0xff]  ;;  %v221_v20 = vld [vmem:[%s803_s3 + $0x78] sm:$0xff]  ;;  %v220_v22 = vld [vmem:[%s803_s3 + $0x70] sm:$0xff] }
   0x8   :  { %99 = vmatpush.msra.mxu1 %v412_v8  ;;  %138 = vmatpush.msra.mxu2 %v423_v9  ;;  %v27_v19 = vld [vmem:[%s802_s1 + $0x8] sm:$0xff]  ;;  %v419_v23 = vld [vmem:[%s802_s1 + $0x80] sm:$0xff]  ;;  %v446_v27 = vld [vmem:[%s803_s3 + $0xf8] sm:$0xff] }
   0x9   :  { %58 = vmatpush.msra.mxu0 %v30_v10  ;;  %v408_v21 = vld [vmem:[%s802_s1 + $0x48] sm:$0xff]  ;;  %v26_v24 = vld [vmem:[%s802_s1] sm:$0xff]  ;;  %222 = vmatpush.msra.mxu3 %v221_v20  ;;  %v462_v28 = vld [vmem:[%s803_s3 + $0x178] sm:$0xff] }
   0xa   :  { %100 = vmatpush.msra.mxu1 %v411_v11  ;;  %139 = vmatpush.msra.mxu2 %v422_v12  ;;  %v22_v25 = vld [vmem:[%s804_s0] sm:$0xff]  ;;  %v445_v29 = vld [vmem:[%s803_s3 + $0xf0] sm:$0xff]  ;;  %v219_v30 = vld [vmem:[%s803_s3 + $0x68] sm:$0xff] }
   0xb   :  { %59 = vmatpush.msra.mxu0 %v29_v13  ;;  %v407_v26 = vld [vmem:[%s802_s1 + $0x40] sm:$0xff]  ;;  %223 = vmatpush.msra.mxu3 %v220_v22  ;;  %v461_v31 = vld [vmem:[%s803_s3 + $0x170] sm:$0xff]  ;;  %v444_v32 = vld [vmem:[%s803_s3 + $0xe8] sm:$0xff] }
   0xc   :  { %101 = vmatpush.msra.mxu1 %v410_v14  ;;  %140 = vmatpush.msra.mxu2 %v421_v15  ;;  %v218_v33 = vld [vmem:[%s803_s3 + $0x60] sm:$0xff]  ;;  %v460_v34 = vld [vmem:[%s803_s3 + $0x168] sm:$0xff]  ;;  %v217_v38 = vld [vmem:[%s803_s3 + $0x58] sm:$0xff] }
   0xd   :  { %60 = vmatpush.msra.mxu0 %v28_v16  ;;  %224 = vmatpush.msra.mxu3 %v219_v30  ;;  %v443_v35 = vld [vmem:[%s803_s3 + $0xe0] sm:$0xff]  ;;  %v23_v36 = vld [vmem:[%s804_s0 + $0x8] sm:$0xff]  ;;  %v442_v39 = vld [vmem:[%s803_s3 + $0xd8] sm:$0xff] }
   0xe   :  { %102 = vmatpush.msra.mxu1 %v409_v17  ;;  %141 = vmatpush.msra.mxu2 %v420_v18  ;;  %v459_v37 = vld [vmem:[%s803_s3 + $0x160] sm:$0xff]  ;;  %v458_v40 = vld [vmem:[%s803_s3 + $0x158] sm:$0xff]  ;;  %v216_v41 = vld [vmem:[%s803_s3 + $0x50] sm:$0xff] }
   0xf   :  { %61 = vmatpush.msra.mxu0 %v27_v19  ;;  %225 = vmatpush.msra.mxu3 %v218_v33  ;;  %v441_v42 = vld [vmem:[%s803_s3 + $0xd0] sm:$0xff]  ;;  %v215_v44 = vld [vmem:[%s803_s3 + $0x48] sm:$0xff]  ;;  %v25_v48 = vld [vmem:[%s804_s0 + $0x18] sm:$0xff] }
  0x10   :  { %103 = vmatpush.msra.mxu1 %v408_v21  ;;  %142 = vmatpush.msra.mxu2 %v419_v23  ;;  %v457_v43 = vld [vmem:[%s803_s3 + $0x150] sm:$0xff]  ;;  %v440_v45 = vld [vmem:[%s803_s3 + $0xc8] sm:$0xff]  ;;  %v214_v49 = vld [vmem:[%s803_s3 + $0x40] sm:$0xff] }
  0x11   :  { %62 = vmatpush.msra.mxu0 %v26_v24  ;;  %427 = vmatmul.msk.f32.vlgmr.msra.gmra.mxu2 %vm34_vm0, %v22_v25  ;;  %v24_v46 = vld [vmem:[%s804_s0 + $0x10] sm:$0xff]  ;;  %v456_v47 = vld [vmem:[%s803_s3 + $0x148] sm:$0xff]  ;;  %v439_v50 = vld [vmem:[%s803_s3 + $0xc0] sm:$0xff] }
  0x12   :  { %403 = vmatmul.msk.f32.vlgmr.msra.gmra.mxu0 %vm34_vm0, %v22_v25  ;;  %104 = vmatpush.msra.mxu1 %v407_v26  ;;  %v455_v51 = vld [vmem:[%s803_s3 + $0x140] sm:$0xff]  ;;  %v213_v52 = vld [vmem:[%s803_s3 + $0x38] sm:$0xff]  ;;  %v212_v55 = vld [vmem:[%s803_s3 + $0x30] sm:$0xff] }
  0x13   :  { %272 = vmatpush.msrb.mxu0 %v446_v27  ;;  %415 = vmatmul.msk.f32.vlgmr.msra.gmra.mxu1 %vm34_vm0, %v22_v25  ;;  %v438_v53 = vld [vmem:[%s803_s3 + $0xb8] sm:$0xff]  ;;  %v437_v56 = vld [vmem:[%s803_s3 + $0xb0] sm:$0xff]  ;;  %v211_v58 = vld [vmem:[%s803_s3 + $0x28] sm:$0xff] }
  0x14   :  { %463 = vmatpush.msrb.mxu2 %v446_v27  ;;  %318 = vmatpush.msrb.mxu1 %v462_v28  ;;  %v454_v54 = vld [vmem:[%s803_s3 + $0x138] sm:$0xff]  ;;  %v453_v57 = vld [vmem:[%s803_s3 + $0x130] sm:$0xff]  ;;  %v436_v59 = vld [vmem:[%s803_s3 + $0xa8] sm:$0xff] }
  0x15   :  { %273 = vmatpush.msrb.mxu0 %v445_v29  ;;  %226 = vmatpush.msra.mxu3 %v217_v38  ;;  %v452_v60 = vld [vmem:[%s803_s3 + $0x128] sm:$0xff]  ;;  %v210_v61 = vld [vmem:[%s803_s3 + $0x20] sm:$0xff]  ;;  %v209_v0 = vld [vmem:[%s803_s3 + $0x18] sm:$0xff] }
  0x16   :  { %464 = vmatpush.msrb.mxu2 %v445_v29  ;;  %319 = vmatpush.msrb.mxu1 %v461_v31  ;;  %v435_v62 = vld [vmem:[%s803_s3 + $0xa0] sm:$0xff]  ;;  %v434_v1 = vld [vmem:[%s803_s3 + $0x98] sm:$0xff]  ;;  %v208_v3 = vld [vmem:[%s803_s3 + $0x10] sm:$0xff] }
  0x17   :  { %274 = vmatpush.msrb.mxu0 %v444_v32  ;;  %227 = vmatpush.msra.mxu3 %v216_v41  ;;  %v451_v63 = vld [vmem:[%s803_s3 + $0x120] sm:$0xff]  ;;  %v450_v2 = vld [vmem:[%s803_s3 + $0x118] sm:$0xff]  ;;  %v433_v4 = vld [vmem:[%s803_s3 + $0x90] sm:$0xff] }
  0x18   :  { %465 = vmatpush.msrb.mxu2 %v444_v32  ;;  %320 = vmatpush.msrb.mxu1 %v460_v34  ;;  %v449_v5 = vld [vmem:[%s803_s3 + $0x110] sm:$0xff]  ;;  %v207_v6 = vld [vmem:[%s803_s3 + $0x8] sm:$0xff]  ;;  %v206_v9 = vld [vmem:[%s803_s3] sm:$0xff] }
  0x19   :  { %275 = vmatpush.msrb.mxu0 %v443_v35  ;;  %428 = vmatmul.msk.f32.gmra.mxu2 %vm34_vm0, %v23_v36  ;;  %v432_v7 = vld [vmem:[%s803_s3 + $0x88] sm:$0xff]  ;;  %v431_v10 = vld [vmem:[%s803_s3 + $0x80] sm:$0xff] }
  0x1a   :  { %404 = vmatmul.msk.f32.gmra.mxu0 %vm34_vm0, %v23_v36  ;;  %466 = vmatpush.msrb.mxu2 %v443_v35  ;;  %v448_v8 = vld [vmem:[%s803_s3 + $0x108] sm:$0xff]  ;;  %v447_v11 = vld [vmem:[%s803_s3 + $0x100] sm:$0xff] }
  0x1b   :  { %321 = vmatpush.msrb.mxu1 %v459_v37  ;;  %276 = vmatpush.msrb.mxu0 %v442_v39  ;;  %v479_v14 = vld [vmem:[%s805_s2] ss:$0 sm:$0xff] }
  0x1c   :  { %416 = vmatmul.msk.f32.gmra.mxu1 %vm34_vm0, %v23_v36  ;;  %467 = vmatpush.msrb.mxu2 %v442_v39 }
  0x1d   :  { %322 = vmatpush.msrb.mxu1 %v458_v40  ;;  %277 = vmatpush.msrb.mxu0 %v441_v42 }
  0x1e   :  { %468 = vmatpush.msrb.mxu2 %v441_v42  ;;  %228 = vmatpush.msra.mxu3 %v215_v44 }
  0x1f   :  { %323 = vmatpush.msrb.mxu1 %v457_v43  ;;  %278 = vmatpush.msrb.mxu0 %v440_v45 }
  0x20   :  { %469 = vmatpush.msrb.mxu2 %v440_v45  ;;  %229 = vmatpush.msra.mxu3 %v214_v49 }
  0x21   :  { %429 = vmatmul.msk.f32.gmra.mxu2 %vm34_vm0, %v24_v46  ;;  %324 = vmatpush.msrb.mxu1 %v456_v47 }
  0x22   :  { %405 = vmatmul.msk.f32.gmra.mxu0 %vm34_vm0, %v24_v46  ;;  %470 = vmatpush.msrb.mxu2 %v439_v50 }
  0x23   :  { %279 = vmatpush.msrb.mxu0 %v439_v50  ;;  %325 = vmatpush.msrb.mxu1 %v455_v51 }
  0x24   :  { %417 = vmatmul.msk.f32.gmra.mxu1 %vm34_vm0, %v24_v46  ;;  %230 = vmatpush.msra.mxu3 %v213_v52 }
  0x25   :  { %280 = vmatpush.msrb.mxu0 %v438_v53  ;;  %471 = vmatpush.msrb.mxu2 %v438_v53 }
  0x26   :  { %326 = vmatpush.msrb.mxu1 %v454_v54  ;;  %231 = vmatpush.msra.mxu3 %v212_v55 }
  0x27   :  { %281 = vmatpush.msrb.mxu0 %v437_v56  ;;  %472 = vmatpush.msrb.mxu2 %v437_v56 }
  0x28   :  { %327 = vmatpush.msrb.mxu1 %v453_v57  ;;  %232 = vmatpush.msra.mxu3 %v211_v58  ;;  %v480_v58 = vld [vmem:[%s806_s4] ss:$0 sm:$0xff] }
  0x29   :  { %430 = vmatmul.msk.f32.gmra.mxu2 %vm34_vm0, %v25_v48  ;;  %282 = vmatpush.msrb.mxu0 %v436_v59 }
  0x2a   :  { %406 = vmatmul.msk.f32.gmra.mxu0 %vm34_vm0, %v25_v48  ;;  %473 = vmatpush.msrb.mxu2 %v436_v59 }
  0x2b   :  { %328 = vmatpush.msrb.mxu1 %v452_v60  ;;  %233 = vmatpush.msra.mxu3 %v210_v61 }
  0x2c   :  { %418 = vmatmul.msk.f32.gmra.mxu1 %vm34_vm0, %v25_v48  ;;  %283 = vmatpush.msrb.mxu0 %v435_v62 }
  0x2d   :  { %474 = vmatpush.msrb.mxu2 %v435_v62  ;;  %329 = vmatpush.msrb.mxu1 %v451_v63 }
  0x2e   :  { %234 = vmatpush.msra.mxu3 %v209_v0  ;;  %284 = vmatpush.msrb.mxu0 %v434_v1 }
  0x2f   :  { %475 = vmatpush.msrb.mxu2 %v434_v1  ;;  %330 = vmatpush.msrb.mxu1 %v450_v2 }
  0x30   :  { %235 = vmatpush.msra.mxu3 %v208_v3  ;;  %285 = vmatpush.msrb.mxu0 %v433_v4 }
  0x31   :  { %476 = vmatpush.msrb.mxu2 %v433_v4  ;;  %331 = vmatpush.msrb.mxu1 %v449_v5 }
  0x32   :  { %236 = vmatpush.msra.mxu3 %v207_v6  ;;  %286 = vmatpush.msrb.mxu0 %v432_v7 }
  0x33   :  { %477 = vmatpush.msrb.mxu2 %v432_v7  ;;  %332 = vmatpush.msrb.mxu1 %v448_v8 }
  0x34   :  { %237 = vmatpush.msra.mxu3 %v206_v9  ;;  %287 = vmatpush.msrb.mxu0 %v431_v10 }
  0x35   :  { %478 = vmatpush.msrb.mxu2 %v431_v10  ;;  %333 = vmatpush.msrb.mxu1 %v447_v11 }
  0x8f   :  { %v64_v12 = vpop.f32.mrf.mxu0 }
  0x90   :  { %v106_v13 = vpop.f32.mrf.mxu1  ;;  %v161_v16 = vrot.slane %v64_v12, 7 }
  0x91   :  { %v107_v19 = vadd.f32 %v479_v14, %v106_v13 }
  0x92   :  { %v171_v21 = vsel %vm160_vm1, 0.0, %v161_v16 }
  0x93   :  { %v190_v24 = vadd.f32 %v171_v21, %v107_v19 }
  0x94   :  { %v144_v15 = vpop.f32.mrf.mxu2 }
  0x95   :  { %v178_v27 = vrot.slane %v144_v15, 1 }
  0x97   :  { %v67_v17 = vpop.f32.mrf.mxu0 }
  0x98   :  { %v162_v18 = vrot.slane %v67_v17, 7 }
  0x99   :  { %v109_v20 = vpop.f32.mrf.mxu1 }
  0x9a   :  { %v110_v22 = vadd.f32 %v479_v14, %v109_v20  ;;  %v163_v23 = vsel %vm160_vm1, %v161_v16, %v162_v18 }
  0x9c   :  { %v191_v25 = vadd.f32 %v163_v23, %v110_v22  ;;  %v147_v26 = vpop.f32.mrf.mxu2 }
  0x9d   :  { %v179_v28 = vrot.slane %v147_v26, 1 }
  0x9f   :  { %v70_v29 = vpop.f32.mrf.mxu0  ;;  %v180_v30 = vsel %vm177_vm2, %v178_v27, %v179_v28  ;;  %v188_v31 = vsel %vm177_vm2, %v179_v28, 0.0 }
  0xa0   :  { %v195_v32 = vadd.f32 %v191_v25, %v188_v31  ;;  %v194_v34 = vadd.f32 %v190_v24, %v180_v30  ;;  %v164_v38 = vrot.slane %v70_v29, 7 }
  0xa1   :  { %v112_v33 = vpop.f32.mrf.mxu1 }
  0xa2   :  { %199 = vst [vmem:[%s807_s5 + $0x8] sm:$0xff] %v195_v32  ;;  %v202_v35 = vmax.f32 %v194_v34, 0.0  ;;  %v203_v36 = vmax.f32 %v195_v32, 0.0  ;;  %v113_v41 = vadd.f32 %v479_v14, %v112_v33  ;;  %v172_v43 = vsel %vm160_vm1, 0.0, %v164_v38 }
  0xa3   :  { %198 = vst [vmem:[%s807_s5] sm:$0xff] %v194_v34 }
  0xa4   :  { %v150_v37 = vpop.f32.mrf.mxu2  ;;  %238 = vmatmul.f32.vlgmr.msra.gmra.mxu3 %v202_v35  ;;  %288 = vmatmul.f32.vlgmr.msrb.gmra.mxu0 %v202_v35  ;;  %v192_v46 = vadd.f32 %v172_v43, %v113_v41 }
  0xa5   :  { %291 = vmatmul.f32.vlgmr.msrb.gmra.mxu2 %v203_v36  ;;  %334 = vmatmul.f32.vlgmr.msrb.gmra.mxu1 %v202_v35  ;;  %v181_v49 = vrot.slane %v150_v37, 1 }
  0xa7   :  { %v73_v39 = vpop.f32.mrf.mxu0 }
  0xa8   :  { %v165_v40 = vrot.slane %v73_v39, 7 }
  0xa9   :  { %v115_v42 = vpop.f32.mrf.mxu1 }
  0xaa   :  { %v116_v44 = vadd.f32 %v479_v14, %v115_v42  ;;  %v166_v45 = vsel %vm160_vm1, %v164_v38, %v165_v40 }
  0xac   :  { %v193_v47 = vadd.f32 %v166_v45, %v116_v44  ;;  %v153_v48 = vpop.f32.mrf.mxu2  ;;  %241 = vmatmul.f32.gmra.mxu3 %v203_v36 }
  0xad   :  { %v182_v50 = vrot.slane %v153_v48, 1  ;;  %337 = vmatmul.f32.gmra.mxu1 %v203_v36 }
  0xaf   :  { %v183_v51 = vsel %vm177_vm2, %v181_v49, %v182_v50  ;;  %v189_v52 = vsel %vm177_vm2, %v182_v50, 0.0 }
  0xb0   :  { %v197_v53 = vadd.f32 %v193_v47, %v189_v52  ;;  %v196_v54 = vadd.f32 %v192_v46, %v183_v51 }
  0xb2   :  { %201 = vst [vmem:[%s807_s5 + $0x18] sm:$0xff] %v197_v53  ;;  %v204_v55 = vmax.f32 %v196_v54, 0.0  ;;  %v205_v56 = vmax.f32 %v197_v53, 0.0 }
  0xb3   :  { %200 = vst [vmem:[%s807_s5 + $0x10] sm:$0xff] %v196_v54 }
  0xb4   :  { %244 = vmatmul.f32.gmra.mxu3 %v204_v55  ;;  %294 = vmatmul.f32.gmra.mxu2 %v204_v55 }
  0xb5   :  { %340 = vmatmul.f32.gmra.mxu1 %v204_v55 }
  0xbc   :  { %247 = vmatmul.f32.gmra.mxu3 %v205_v56  ;;  %297 = vmatmul.f32.gmra.mxu2 %v205_v56 }
  0xbd   :  { %343 = vmatmul.f32.gmra.mxu1 %v205_v56 }
 0x121   :  { %v289_v59 = vpop.f32.mrf.mxu0 }
 0x122   :  { %v335_v57 = vpop.f32.mrf.mxu1  ;;  %v290_v62 = vadd.f32 %v480_v58, %v289_v59 }
 0x123   :  { %v367_v1 = vrot.slane %v335_v57, 1 }
 0x127   :  { %v239_v60 = vpop.f32.mrf.mxu3 }
 0x128   :  { %v351_v61 = vrot.slane %v239_v60, 7  ;;  %v292_v5 = vpop.f32.mrf.mxu2 }
 0x129   :  { %v293_v10 = vadd.f32 %v480_v58, %v292_v5 }
 0x12a   :  { %v361_v63 = vsel %vm160_vm1, 0.0, %v351_v61  ;;  %v338_v0 = vpop.f32.mrf.mxu1 }
 0x12b   :  { %v379_v2 = vadd.f32 %v361_v63, %v290_v62  ;;  %v368_v3 = vrot.slane %v338_v0, 1 }
 0x12d   :  { %v369_v4 = vsel %vm177_vm2, %v367_v1, %v368_v3  ;;  %v377_v14 = vsel %vm177_vm2, %v368_v3, 0.0 }
 0x12e   :  { %v383_v6 = vadd.f32 %v379_v2, %v369_v4 }
 0x12f   :  { %v242_v7 = vpop.f32.mrf.mxu3 }
 0x130   :  { %v387_v8 = vmax.f32 %v383_v6, 0.0  ;;  %v352_v9 = vrot.slane %v242_v7, 7 }
 0x132   :  { %391 = vst [vmem:[%s808_s6] sm:$0xff] %v387_v8  ;;  %v353_v11 = vsel %vm160_vm1, %v351_v61, %v352_v9  ;;  %v341_v12 = vpop.f32.mrf.mxu1 }
 0x133   :  { %v380_v13 = vadd.f32 %v353_v11, %v293_v10  ;;  %v370_v23 = vrot.slane %v341_v12, 1 }
 0x135   :  { %v384_v15 = vadd.f32 %v380_v13, %v377_v14 }
 0x137   :  { %v388_v16 = vmax.f32 %v384_v15, 0.0  ;;  %v245_v17 = vpop.f32.mrf.mxu3  ;;  %v295_v18 = vpop.f32.mrf.mxu2 }
 0x138   :  { %v354_v19 = vrot.slane %v245_v17, 7  ;;  %v296_v20 = vadd.f32 %v480_v58, %v295_v18 }
 0x139   :  { %392 = vst [vmem:[%s808_s6 + $0x8] sm:$0xff] %v388_v16 }
 0x13a   :  { %v362_v21 = vsel %vm160_vm1, 0.0, %v354_v19  ;;  %v344_v22 = vpop.f32.mrf.mxu1 }
 0x13b   :  { %v381_v24 = vadd.f32 %v362_v21, %v296_v20  ;;  %v371_v25 = vrot.slane %v344_v22, 1 }
 0x13d   :  { %v372_v26 = vsel %vm177_vm2, %v370_v23, %v371_v25  ;;  %v378_v35 = vsel %vm177_vm2, %v371_v25, 0.0 }
 0x13e   :  { %v385_v27 = vadd.f32 %v381_v24, %v372_v26 }
 0x13f   :  { %v248_v28 = vpop.f32.mrf.mxu3  ;;  %v298_v29 = vpop.f32.mrf.mxu2 }
 0x140   :  { %v389_v30 = vmax.f32 %v385_v27, 0.0  ;;  %v355_v31 = vrot.slane %v248_v28, 7  ;;  %v299_v32 = vadd.f32 %v480_v58, %v298_v29 }
 0x142   :  { %393 = vst [vmem:[%s808_s6 + $0x10] sm:$0xff] %v389_v30  ;;  %v356_v33 = vsel %vm160_vm1, %v354_v19, %v355_v31 }
 0x143   :  { %v382_v34 = vadd.f32 %v356_v33, %v299_v32 }
 0x145   :  { %v386_v36 = vadd.f32 %v382_v34, %v378_v35 }
 0x147   :  { %v390_v37 = vmax.f32 %v386_v36, 0.0 }
 0x149   :  { %394 = vst [vmem:[%s808_s6 + $0x18] sm:$0xff] %v390_v37 }

</bundles_post_ra>
